<compile_context>
chip_gen: v6e
topology: v6e:2x2x1
jax: 0.10.0
libtpu: 0.0.40
codegen_flags: <defaults>
</compile_context>

<pallas_src>
import functools

import jax
import jax.numpy as jnp
from jax import lax
from jax.experimental import pallas as pl
from jax.experimental.pallas import tpu as pltpu


_NORM_IDX = {98: (60, 72), 68: (36, 45), 29: (8, 9)}


def _nme_kernel(pred_ref, gt_ref, mask_ref, pair_ref, out_ref, *,
                lane_a, lane_b, inv_nb, batch, tile_b):
    step = pl.program_id(0)

    # (TB, 2N) interleaved blocks; upcast to f32 right after the (possibly
    # bf16) load -- compute always in f32.
    p = pred_ref[...].astype(jnp.float32)
    g = gt_ref[...].astype(jnp.float32)
    m = mask_ref[...].astype(jnp.float32)              # (TB, N)
    pair = pair_ref[...]                               # (2N, N), exact 0/1 f32

    d = p - g
    d2 = d * d                                         # (TB, 2N)
    # Adjacent-lane pair sum dx^2 + dy^2 via the idle MXU (exact w/ HIGHEST).
    sq = jnp.dot(d2, pair, preferred_element_type=jnp.float32,
                 precision=lax.Precision.HIGHEST)      # (TB, N)
    dist = jnp.sqrt(sq)                                # (TB, N)
    row_sum = jnp.sum(dist * m, axis=1, keepdims=True)  # (TB, 1)

    # Normalization distance from static lane taps of the interleaved gt block.
    nx = g[:, lane_a:lane_a + 1] - g[:, lane_b:lane_b + 1]
    ny = g[:, lane_a + 1:lane_a + 2] - g[:, lane_b + 1:lane_b + 2]
    inv_norm = lax.rsqrt(nx * nx + ny * ny)            # (TB, 1)

    # Kill rows past the real batch size (ragged last tile reads are
    # undefined; the select shields any NaN/inf they may produce).
    row_ids = step * tile_b + lax.broadcasted_iota(jnp.int32, (tile_b, 1), 0)
    contrib = jnp.where(row_ids < batch, row_sum * inv_norm, 0.0)

    # /N and /B folded into one constant; lane-dense per-tile partial output.
    partial = jnp.sum(contrib) * inv_nb
    out_ref[...] = jnp.broadcast_to(partial, (1, 8, 128)).astype(jnp.float32)


def norm_l2_loss(pred, gt, mask, *, tile_b=2048):
    """pred, gt: (B, N, 2); mask: (B, N).  Returns the scalar NME loss (f32)."""
    B, N, D = gt.shape
    assert D == 2, "landmarks must be (B, N, 2)"
    if N not in _NORM_IDX:
        raise NotImplementedError(f"unsupported number of landmarks: {N}")
    idx_a, idx_b = _NORM_IDX[N]
    two_n = 2 * N

    # Free, contiguous reshapes -- no HBM transpose / pad copies in the wrapper.
    pred2 = pred.reshape(B, two_n)
    gt2 = gt.reshape(B, two_n)

    # Exact 0/1 pairing matrix: column n sums lanes 2n and 2n+1.
    rows = jnp.arange(two_n, dtype=jnp.int32) // 2
    cols = jnp.arange(N, dtype=jnp.int32)
    pair_mat = (rows[:, None] == cols[None, :]).astype(jnp.float32)

    # Batch tile: large (amortizes ~0.35us/step), multiple of 8, or the whole
    # batch when it already fits in one tile (block dim == full dim is legal).
    tile_b = max(8, (int(tile_b) // 8) * 8)
    tb = B if B <= tile_b else tile_b
    num_tiles = pl.cdiv(B, tb)

    kernel = functools.partial(
        _nme_kernel,
        lane_a=2 * idx_a,
        lane_b=2 * idx_b,
        inv_nb=1.0 / (float(N) * float(B)),
        batch=int(B),
        tile_b=int(tb),
    )

    nbytes = lambda x: x.size * x.dtype.itemsize
    cost = pl.CostEstimate(
        flops=int(2 * B * two_n * N + 10 * B * N),
        transcendentals=int(B * (N + 1)),
        bytes_accessed=int(nbytes(pred2) + nbytes(gt2) + nbytes(mask)
                           + nbytes(pair_mat) + num_tiles * 8 * 128 * 4),
    )

    partials = pl.pallas_call(
        kernel,
        out_shape=jax.ShapeDtypeStruct((num_tiles, 8, 128), jnp.float32),
        grid_spec=pltpu.PrefetchScalarGridSpec(
            num_scalar_prefetch=0,
            grid=(num_tiles,),
            in_specs=[
                pl.BlockSpec((tb, two_n), lambda i: (i, 0)),   # pred (B, 2N)
                pl.BlockSpec((tb, two_n), lambda i: (i, 0)),   # gt   (B, 2N)
                pl.BlockSpec((tb, N), lambda i: (i, 0)),       # mask (B, N)
                pl.BlockSpec((two_n, N), lambda i: (0, 0)),    # pairing matrix
            ],
            out_specs=pl.BlockSpec((1, 8, 128), lambda i: (i, 0, 0)),
        ),
        compiler_params=pltpu.CompilerParams(
            dimension_semantics=("parallel",)),
        cost_estimate=cost,
    )(pred2, gt2, mask, pair_mat)

    return jnp.sum(partials[:, 0, 0])


def _reference(pred, gt, mask, idx_a, idx_b):
    dist = jnp.linalg.norm(pred - gt, axis=2)                   # (B, N)
    per_sample = jnp.mean(dist * mask, axis=1)                  # (B,)
    l2_norm = jnp.linalg.norm(gt[:, idx_a, :] - gt[:, idx_b, :], axis=1)
    return jnp.mean(per_sample / l2_norm)


if __name__ == "__main__":
    # Case 1: canonical small shape (batch=2, 68 landmarks) -> single tile.
    B, N = 2, 68
    k_pred, k_gt, k_mask = jax.random.split(jax.random.PRNGKey(0), 3)
    gt = jax.random.uniform(k_gt, (B, N, 2), dtype=jnp.float32) * 64.0
    pred = gt + 0.5 * jax.random.normal(k_pred, (B, N, 2), dtype=jnp.float32)
    mask = (jax.random.uniform(k_mask, (B, N), dtype=jnp.float32) > 0.2).astype(
        jnp.float32)

    loss = norm_l2_loss(pred, gt, mask)
    jax.block_until_ready(loss)
    ref = _reference(pred, gt, mask, 36, 45)
    assert jnp.allclose(loss, ref, rtol=1e-5, atol=1e-5), (loss, ref)

    # Case 2: multi-tile grid with a ragged last tile (batch=20, 29 landmarks,
    # tile_b=8) -- exercises the parallel partial-sum path and the OOB mask.
    B2, N2 = 20, 29
    k_pred2, k_gt2, k_mask2 = jax.random.split(jax.random.PRNGKey(1), 3)
    gt_b = jax.random.uniform(k_gt2, (B2, N2, 2), dtype=jnp.float32) * 64.0
    pred_b = gt_b + 0.5 * jax.random.normal(k_pred2, (B2, N2, 2),
                                            dtype=jnp.float32)
    mask_b = (jax.random.uniform(k_mask2, (B2, N2), dtype=jnp.float32) > 0.2
              ).astype(jnp.float32)

    loss_b = norm_l2_loss(pred_b, gt_b, mask_b, tile_b=8)
    jax.block_until_ready(loss_b)
    ref_b = _reference(pred_b, gt_b, mask_b, 8, 9)
    assert jnp.allclose(loss_b, ref_b, rtol=1e-5, atol=1e-5), (loss_b, ref_b)

    print("KERNEL_OK")
</pallas_src>

<mosaic_0001>
module attributes {stable_mosaic.version = 11 : i64} {
  func.func @_nme_kernel(%arg0: i32, %arg1: memref<2x136xf32, #tpu.memory_space<vmem>>, %arg2: memref<2x136xf32, #tpu.memory_space<vmem>>, %arg3: memref<2x68xf32, #tpu.memory_space<vmem>>, %arg4: memref<136x68xf32, #tpu.memory_space<vmem>>, %arg5: memref<1x8x128xf32, #tpu.memory_space<vmem>>) attributes {dimension_semantics = [#tpu.dimension_semantics<parallel>], iteration_bounds = array<i64: 1>, scalar_prefetch = 0 : i64, scratch_operands = 0 : i64, tpu.core_type = #tpu.core_type<tc>, window_params = [{transform_indices = @transform_0, window_bounds = array<i64: 2, 136>}, {transform_indices = @transform_1, window_bounds = array<i64: 2, 136>}, {transform_indices = @transform_2, window_bounds = array<i64: 2, 68>}, {pipeline_mode = #tpu.pipeline_mode<synchronous>, transform_indices = @transform_3, window_bounds = array<i64: 136, 68>}, {transform_indices = @transform_4, window_bounds = array<i64: 1, 8, 128>}]} {
    %c0 = arith.constant 0 : index
    %c0_0 = arith.constant 0 : index
    %0 = vector.load %arg1[%c0, %c0_0] : memref<2x136xf32, #tpu.memory_space<vmem>>, vector<2x136xf32>
    %c0_1 = arith.constant 0 : index
    %c0_2 = arith.constant 0 : index
    %1 = vector.load %arg2[%c0_1, %c0_2] : memref<2x136xf32, #tpu.memory_space<vmem>>, vector<2x136xf32>
    %c0_3 = arith.constant 0 : index
    %c0_4 = arith.constant 0 : index
    %2 = vector.load %arg3[%c0_3, %c0_4] : memref<2x68xf32, #tpu.memory_space<vmem>>, vector<2x68xf32>
    %c0_5 = arith.constant 0 : index
    %c0_6 = arith.constant 0 : index
    %3 = vector.load %arg4[%c0_5, %c0_6] : memref<136x68xf32, #tpu.memory_space<vmem>>, vector<136x68xf32>
    %4 = arith.subf %0, %1 : vector<2x136xf32>
    %5 = arith.mulf %4, %4 : vector<2x136xf32>
    %cst = arith.constant dense<0.000000e+00> : vector<2x68xf32>
    %6 = tpu.matmul %5, %3, %cst {dimension_numbers = #tpu.dot_dimension_numbers<[1], [0], [0], [1], [0, 0, 1, 1], [], []>, precision = #tpu.contract_precision<fp32>} : vector<2x136xf32>, vector<136x68xf32>, vector<2x68xf32> -> vector<2x68xf32>
    %7 = math.sqrt %6 : vector<2x68xf32>
    %8 = arith.mulf %7, %2 : vector<2x68xf32>
    %cst_7 = arith.constant dense<0.000000e+00> : vector<2xf32>
    %9 = vector.multi_reduction <add>, %8, %cst_7 [1] : vector<2x68xf32> to vector<2xf32>
    %10 = vector.shape_cast %9 : vector<2xf32> to vector<2x1xf32>
    %11 = vector.extract_strided_slice %1 {offsets = [0, 72], sizes = [2, 1], strides = [1, 1]} : vector<2x136xf32> to vector<2x1xf32>
    %12 = vector.extract_strided_slice %1 {offsets = [0, 90], sizes = [2, 1], strides = [1, 1]} : vector<2x136xf32> to vector<2x1xf32>
    %13 = arith.subf %11, %12 : vector<2x1xf32>
    %14 = vector.extract_strided_slice %1 {offsets = [0, 73], sizes = [2, 1], strides = [1, 1]} : vector<2x136xf32> to vector<2x1xf32>
    %15 = vector.extract_strided_slice %1 {offsets = [0, 91], sizes = [2, 1], strides = [1, 1]} : vector<2x136xf32> to vector<2x1xf32>
    %16 = arith.subf %14, %15 : vector<2x1xf32>
    %17 = arith.mulf %13, %13 : vector<2x1xf32>
    %18 = arith.mulf %16, %16 : vector<2x1xf32>
    %19 = arith.addf %17, %18 : vector<2x1xf32>
    %20 = math.rsqrt %19 : vector<2x1xf32>
    %c2_i32 = arith.constant 2 : i32
    %21 = arith.muli %arg0, %c2_i32 : i32
    %22 = tpu.iota {dimensions = array<i32: 0>} : vector<2x1xi32>
    %23 = vector.broadcast %21 : i32 to vector<2x1xi32>
    %24 = arith.addi %23, %22 : vector<2x1xi32>
    %c2_i32_8 = arith.constant 2 : i32
    %25 = vector.broadcast %c2_i32_8 : i32 to vector<2x1xi32>
    %26 = arith.cmpi slt, %24, %25 : vector<2x1xi32>
    %27 = arith.mulf %10, %20 : vector<2x1xf32>
    %cst_9 = arith.constant 0.000000e+00 : f32
    %28 = vector.broadcast %cst_9 : f32 to vector<2x1xf32>
    %29 = arith.select %26, %27, %28 : vector<2x1xi1>, vector<2x1xf32>
    %30 = vector.shape_cast %29 : vector<2x1xf32> to vector<1x2x1xf32>
    %cst_10 = arith.constant dense<0.000000e+00> : vector<1xf32>
    %31 = vector.multi_reduction <add>, %30, %cst_10 [1, 2] : vector<1x2x1xf32> to vector<1xf32>
    %32 = vector.shape_cast %31 : vector<1xf32> to vector<1x1x1xf32>
    %33 = vector.extract %32[0, 0, 0] : f32 from vector<1x1x1xf32>
    %cst_11 = arith.constant 0.0073529412 : f32
    %34 = arith.mulf %33, %cst_11 : f32
    %35 = vector.broadcast %34 : f32 to vector<1x8x128xf32>
    %c0_12 = arith.constant 0 : index
    %c0_13 = arith.constant 0 : index
    %c0_14 = arith.constant 0 : index
    %36 = vector.load %arg5[%c0_12, %c0_13, %c0_14] : memref<1x8x128xf32, #tpu.memory_space<vmem>>, vector<1x8x128xf32>
    tpu.vector_store %arg5[%c0_12, %c0_13, %c0_14], %35 {strides = array<i32>} : memref<1x8x128xf32, #tpu.memory_space<vmem>>, vector<1x8x128xf32>,
    return
  }
  func.func @transform_0(%arg0: i32) -> (i32, i32) {
    %c0_i32 = arith.constant 0 : i32
    %c0_i32_0 = arith.constant 0 : i32
    return %arg0, %c0_i32 : i32, i32
  }
  func.func @transform_1(%arg0: i32) -> (i32, i32) {
    %c0_i32 = arith.constant 0 : i32
    %c0_i32_0 = arith.constant 0 : i32
    return %arg0, %c0_i32 : i32, i32
  }
  func.func @transform_2(%arg0: i32) -> (i32, i32) {
    %c0_i32 = arith.constant 0 : i32
    %c0_i32_0 = arith.constant 0 : i32
    return %arg0, %c0_i32 : i32, i32
  }
  func.func @transform_3(%arg0: i32) -> (i32, i32) {
    %c0_i32 = arith.constant 0 : i32
    %c0_i32_0 = arith.constant 0 : i32
    %c0_i32_1 = arith.constant 0 : i32
    return %c0_i32, %c0_i32_0 : i32, i32
  }
  func.func @transform_4(%arg0: i32) -> (i32, i32, i32) {
    %c0_i32 = arith.constant 0 : i32
    %c0_i32_0 = arith.constant 0 : i32
    %c0_i32_1 = arith.constant 0 : i32
    return %arg0, %c0_i32, %c0_i32_0 : i32, i32, i32
  }
}

</mosaic_0001>

<bundles_post_ra>
// kernel: tpu_custom_call.1
= control target key start
LH: loop header
LB: loop body
LE: loop exit
PB: predicated region body
PF: predicated region fallthrough
CT: control target
= control target key end

     0   :  { %9 = vsyncpa [#allocation3], 0  ;;  %s1385_s0 = inlined_call_operand.hbm [shape: f32[2,136], index: 0, kind: input, shape index: {}]   ;;  %s1386_s1 = inlined_call_operand.hbm [shape: f32[2,136], index: 1, kind: input, shape index: {}]   ;;  %s1387_s2 = inlined_call_operand.vmem [shape: f32[2,68], index: 2, kind: input, shape index: {}]   ;;  %s1388_s3 = inlined_call_operand.hbm [shape: f32[136,68], index: 3, kind: input, shape index: {}]   ;;  %s1389_s4 = inlined_call_operand.hbm [shape: f32[1,8,128], index: 4, kind: output, shape index: {}]  }
   0x1   :  { %10 = vsyncpa [#allocation6], 0 }
   0x2   :  { %11 = vsyncpa [#allocation4], 0  ;;  %s933_s15 = smov [#allocation5]   ;;  %s934_s17 = smov [#allocation2]  }
   0x3   :  { %s28_s16 = sshll.u32 %s933_s15, 4  ;;  %s18_s18 = sshll.u32 %s934_s17, 4  ;;  %s29_s16 = int_to_ptr.vmem [resolvable:$true] %s28_s16  ;;  %s19_s18 = int_to_ptr.vmem [resolvable:$true] %s18_s18 }
   0x4   :  { %s855_s19 = scalar_lea.vmem %s29_s16, 64  ;;  %p860_p1 = scmp.lt.s32.totalorder %s29_s16, %s29_s16 }
   0x5   :  { %p856_p0 = scmp.ne.s32.totalorder %s29_s16, %s855_s19  ;;  %p861_p2 = scmp.lt.s32.totalorder %s855_s19, %s855_s19 }
   0x7   :  { %p862_p3 = por %p861_p2, %p860_p1 }
   0x9   :  { %p863_p4 = pnand %p862_p3, %p856_p0 }
   0xb   :  { %866 = shalt.err (!%p863_p4)
}
   0xc   :  { %31 = dma.hbm_to_vmem [thread:$0]  %s1386_s1, 64, %s29_s16, [#allocation6]  }
   0xd   :  { %s875_s22 = scalar_lea.vmem %s19_s18, 64  ;;  %p880_p6 = scmp.lt.s32.totalorder %s19_s18, %s19_s18 }
   0xe   :  { %p876_p5 = scmp.ne.s32.totalorder %s19_s18, %s875_s22  ;;  %p881_p7 = scmp.lt.s32.totalorder %s875_s22, %s875_s22 }
  0x10   :  { %p882_p8 = por %p881_p7, %p880_p6 }
  0x12   :  { %p883_p9 = pnand %p882_p8, %p876_p5 }
  0x14   :  { %886 = shalt.err (!%p883_p9)
}
  0x15   :  { %21 = dma.hbm_to_vmem [thread:$0]  %s1385_s0, 64, %s19_s18, [#allocation3]  }
  0x16   :  { %s935_s25 = smov [#allocation7]  }
  0x17   :  { %s39_s26 = sshll.u32 %s935_s25, 4  ;;  %s40_s26 = int_to_ptr.vmem [resolvable:$true] %s39_s26 }
  0x18   :  { %s895_s27 = scalar_lea.vmem %s40_s26, 2176  ;;  %p900_p11 = scmp.lt.s32.totalorder %s40_s26, %s40_s26 }
  0x19   :  { %p896_p10 = scmp.ne.s32.totalorder %s40_s26, %s895_s27  ;;  %p901_p12 = scmp.lt.s32.totalorder %s895_s27, %s895_s27 }
  0x1b   :  { %p902_p13 = por %p901_p12, %p900_p11 }
  0x1d   :  { %p903_p0 = pnand %p902_p13, %p896_p10 }
  0x1f   :  { %906 = shalt.err (!%p903_p0)
}
  0x20   :  { %s936_s1 = smov 128   ;;  %s937_s28 = smov 8  }
  0x21   :  { %45 = dma.hbm_to_vmem [thread:$0]  %s1388_s3, 2176, %s40_s26, [#allocation6], %s936_s1, %s936_s1, %s937_s28  }
  0x22   :  { %927 = dma.done.wait [#allocation3], 64  }
  0x23   :  { %928 = vsyncadd [#allocation3], 4294967232 }
  0x24   :  { %929 = dma.done.wait [#allocation6], 2240  }
  0x25   :  { %930 = vsyncadd [#allocation6], 4294965056  ;;  %v938_v0 = vmov 0.0   ;;  %v939_v1 = vmov 1983009808   ;;  %v81_v3 = vlaneseq  ;;  %v73_v8 = vld [vmem:[#allocation7 + $0x78] sm:$0xff] }
  0x26   :  { %90 = vmatprep.subr.mxu0 %v938_v0  ;;  %187 = vmatprep.subr.mxu1 %v938_v0  ;;  %v79_v2 = vunpack.c.l.s4 %v939_v1  ;;  %v980_v4 = vld [vmem:[#allocation5] sm:$0xf]  ;;  %v55_v7 = vld [vmem:[#allocation2] sm:$0xf]  ;;  %s940_s0 = smov 110   ;;  %v986_v10 = vand.u32 4294901760, %v73_v8 }
  0x27   :  { %v982_v6 = vshrl.u32 %v81_v3, 7  ;;  %770 = vrot.lane.b32.xlu0 %v980_v4, %s940_s0  ;;  %v75_v9 = vsub.f32 %v55_v7, %v980_v4  ;;  %v72_v11 = vld [vmem:[#allocation7 + $0x70] sm:$0xff]  ;;  %v71_v12 = vld [vmem:[#allocation7 + $0x68] sm:$0xff]  ;;  %v70_v13 = vld [vmem:[#allocation7 + $0x60] sm:$0xff]  ;;  %vm87_vm0 = vcmask 64512   ;;  %s941_s3 = smov 127  }
  0x28   :  { %v80_v5 = vunpack.c.0.s8 %v79_v2  ;;  %v988_v14 = vand.u32 4294901760, %v72_v11  ;;  %v990_v15 = vand.u32 4294901760, %v71_v12  ;;  %v992_v16 = vand.u32 4294901760, %v70_v13  ;;  %v69_v17 = vld [vmem:[#allocation7 + $0x58] sm:$0xff]  ;;  %v68_v18 = vld [vmem:[#allocation7 + $0x50] sm:$0xff]  ;;  %v67_v19 = vld [vmem:[#allocation7 + $0x48] sm:$0xff]  ;;  %92 = vmatpush1.msra.mxu0 %v986_v10 }
  0x29   :  { %v995_v20 = vand.u32 4294901760, %v69_v17  ;;  %v998_v21 = vsub.f32 %v73_v8, %v986_v10  ;;  %v1000_v22 = vand.u32 4294901760, %v68_v18  ;;  %v66_v23 = vld [vmem:[#allocation7 + $0x40] sm:$0xff]  ;;  %93 = vmatprep.subr.mxu0 %v938_v0  ;;  %v65_v27 = vld [vmem:[#allocation7 + $0x38] sm:$0xff]  ;;  %v76_v28 = vmul.f32 %v75_v9, %v75_v9  ;;  %v64_v32 = vld [vmem:[#allocation7 + $0x30] sm:$0xff]  ;;  %s942_s7 = smov 56  }
  0x2a   :  { %v1003_v24 = vsub.s32 %v80_v5, %v982_v6  ;;  %v1007_v25 = vsub.f32 %v72_v11, %v988_v14  ;;  %v1010_v26 = vsub.f32 %v71_v12, %v990_v15  ;;  %95 = vmatpush1.msra.mxu0 %v988_v14  ;;  %v1014_v30 = vand.u32 4294901760, %v67_v19  ;;  %v63_v41 = vld [vmem:[#allocation7 + $0x28] sm:$0xff]  ;;  %v62_v52 = vld [vmem:[#allocation7 + $0x20] sm:$0xff]  ;;  %v61_v59 = vld [vmem:[#allocation7 + $0x18] sm:$0xff] }
  0x2b   :  { %v190_v29 = vand.u32 4294901760, %v998_v21  ;;  %v1017_v31 = vsub.f32 %v70_v13, %v992_v16  ;;  %96 = vmatprep.subr.mxu0 %v938_v0  ;;  %v1022_v35 = vand.u32 4294901760, %v66_v23  ;;  %v1025_v36 = vsub.f32 %v69_v17, %v995_v20  ;;  %v60_v8 = vld [vmem:[#allocation7 + $0x10] sm:$0xff] }
  0x2c   :  { %v197_v33 = vand.u32 4294901760, %v1007_v25  ;;  %v204_v34 = vand.u32 4294901760, %v1010_v26  ;;  %98 = vmatpush1.msra.mxu0 %v990_v15  ;;  %v1032_v39 = vand.u32 4294901760, %v65_v27  ;;  %v1035_v40 = vsub.f32 %v68_v18, %v1000_v22  ;;  %v59_v18 = vld [vmem:[#allocation7 + $0x8] sm:$0xff] }
  0x2d   :  { %v191_v37 = vsub.f32 %v998_v21, %v190_v29  ;;  %v211_v38 = vand.u32 4294901760, %v1017_v31  ;;  %99 = vmatprep.subr.mxu0 %v938_v0  ;;  %v218_v44 = vand.u32 4294901760, %v1025_v36  ;;  %v1045_v45 = vand.u32 4294901760, %v64_v32 }
  0x2e   :  { %v198_v42 = vsub.f32 %v1007_v25, %v197_v33  ;;  %v205_v43 = vsub.f32 %v1010_v26, %v204_v34  ;;  %101 = vmatpush1.msra.mxu0 %v992_v16  ;;  %v225_v48 = vand.u32 4294901760, %v1035_v40  ;;  %v1053_v49 = vsub.f32 %v67_v19, %v1014_v30 }
  0x2f   :  { %v192_v46 = vand.u32 4294901760, %v191_v37  ;;  %v212_v47 = vsub.f32 %v1017_v31, %v211_v38  ;;  %102 = vmatprep.subr.mxu0 %v938_v0  ;;  %v1056_v51 = vand.u32 4294901760, %v63_v41  ;;  %v219_v54 = vsub.f32 %v1025_v36, %v218_v44 }
  0x30   :  { %v199_v50 = vand.u32 4294901760, %v198_v42  ;;  %104 = vmatpush1.msra.mxu0 %v995_v20  ;;  %v206_v53 = vand.u32 4294901760, %v205_v43  ;;  %v232_v55 = vand.u32 4294901760, %v1053_v49  ;;  %v1064_v56 = vsub.f32 %v66_v23, %v1022_v35 }
  0x31   :  { %193 = vmatpush1.msra.mxu1 %v192_v46  ;;  %v84_v57 = vrot.slane %v76_v28, %v1003_v24  ;;  %105 = vmatprep.subr.mxu0 %v938_v0  ;;  %v226_v58 = vsub.f32 %v1035_v40, %v225_v48  ;;  %v1073_v60 = vsub.f32 %v65_v27, %v1032_v39  ;;  %v213_v61 = vand.u32 4294901760, %v212_v47 }
  0x32   :  { %194 = vmatprep.subr.mxu1 %v938_v0  ;;  %107 = vmatpush1.msra.mxu0 %v1000_v22  ;;  %v1076_v62 = vand.u32 4294901760, %v62_v52  ;;  %v1395_v63 = vand.u32 4294901760, %v1064_v56  ;;  %v1080_v1 = vsub.f32 %v64_v32, %v1045_v45  ;;  %v233_v2 = vsub.f32 %v1053_v49, %v232_v55 }
  0x33   :  { %200 = vmatpush1.msra.mxu1 %v199_v50  ;;  %108 = vmatprep.subr.mxu0 %v938_v0  ;;  %v220_v3 = vand.u32 4294901760, %v219_v54  ;;  %v1088_v5 = vand.u32 4294901760, %v61_v59  ;;  %v1394_v7 = vand.u32 4294901760, %v1073_v60  ;;  %v1092_v9 = vsub.f32 %v63_v41, %v1056_v51  ;;  %v58_v41 = vld [vmem:[#allocation7] sm:$0xff] }
  0x34   :  { %201 = vmatprep.subr.mxu1 %v938_v0  ;;  %110 = vmatpush1.msra.mxu0 %v1014_v30  ;;  %v1094_v11 = vand.u32 4294901760, %v84_v57  ;;  %v227_v12 = vand.u32 4294901760, %v226_v58  ;;  %v240_v13 = vsub.f32 %v1064_v56, %v1395_v63  ;;  %v1391_v17 = vand.u32 4294901760, %v1080_v1  ;;  %v74_v54 = vld [vmem:[#allocation7 + $0x80] sm:$0xff] }
  0x35   :  { %207 = vmatpush1.msra.mxu1 %v206_v53  ;;  %111 = vmatprep.subr.mxu0 %v938_v0  ;;  %v1104_v19 = vsub.f32 %v62_v52, %v1076_v62  ;;  %v85_v23 = vcombine.high %v84_v57, %v84_v57  ;;  %v234_v27 = vand.u32 4294901760, %v233_v2  ;;  %v1108_v28 = vand.u32 4294901760, %v60_v8 }
  0x36   :  { %208 = vmatprep.subr.mxu1 %v938_v0  ;;  %113 = vmatpush1.msra.mxu0 %v1022_v35  ;;  %v247_v32 = vsub.f32 %v1073_v60, %v1394_v7  ;;  %v1390_v37 = vand.u32 4294901760, %v1092_v9  ;;  %v1116_v42 = vsub.f32 %v61_v59, %v1088_v5  ;;  %v1121_v46 = vand.u32 4294901760, %v59_v18 }
  0x37   :  { %214 = vmatpush1.msra.mxu1 %v213_v61  ;;  %114 = vmatprep.subr.mxu0 %v938_v0  ;;  %v88_v43 = vsel %vm87_vm0, %v85_v23, 0  ;;  %v241_v50 = vand.u32 4294901760, %v240_v13  ;;  %v254_v52 = vsub.f32 %v1080_v1, %v1391_v17  ;;  %v1392_v53 = vand.u32 4294901760, %v1104_v19 }
  0x38   :  { %215 = vmatprep.subr.mxu1 %v938_v0  ;;  %116 = vmatpush1.msra.mxu0 %v1032_v39  ;;  %v1123_v47 = vand.u32 4294901760, %v88_v43  ;;  %v1131_v58 = vsub.f32 %v84_v57, %v1094_v11  ;;  %v1135_v59 = vand.u32 4294901760, %v58_v41  ;;  %v1141_v2 = vsub.f32 %v60_v8, %v1108_v28 }
  0x39   :  { %221 = vmatpush1.msra.mxu1 %v220_v3  ;;  %117 = vmatprep.subr.mxu0 %v938_v0  ;;  %v248_v3 = vand.u32 4294901760, %v247_v32  ;;  %v261_v57 = vsub.f32 %v1092_v9, %v1390_v37  ;;  %v1150_v13 = vand.u32 4294901760, %v74_v54  ;;  %v1154_v8 = vsub.f32 %v59_v18, %v1121_v46 }
  0x3a   :  { %222 = vmatprep.subr.mxu1 %v938_v0  ;;  %119 = vmatpush1.msra.mxu0 %v1045_v45  ;;  %v1138_v61 = vsub.f32 %v88_v43, %v1123_v47  ;;  %v268_v32 = vsub.f32 %v1104_v19, %v1392_v53  ;;  %v179_v43 = vand.u32 4294901760, %v1131_v58  ;;  %v1396_v37 = vand.u32 4294901760, %v1141_v2 }
  0x3b   :  { %228 = vmatpush1.msra.mxu1 %v227_v12  ;;  %120 = vmatprep.subr.mxu0 %v938_v0  ;;  %v1393_v12 = vand.u32 4294901760, %v1116_v42  ;;  %v1165_v17 = vsub.f32 %v58_v41, %v1135_v59  ;;  %v262_v18 = vand.u32 4294901760, %v261_v57  ;;  %v288_v53 = vand.u32 4294901760, %v1154_v8 }
  0x3c   :  { %229 = vmatprep.subr.mxu1 %v938_v0  ;;  %122 = vmatpush1.msra.mxu0 %v1056_v51  ;;  %v173_v23 = vand.u32 4294901760, %v1138_v61  ;;  %v1178_v41 = vsub.f32 %v74_v54, %v1150_v13  ;;  %v180_v57 = vsub.f32 %v1131_v58, %v179_v43  ;;  %vm765_vm3 = vcmask 549888  }
  0x3d   :  { %235 = vmatpush1.msra.mxu1 %v234_v27  ;;  %123 = vmatprep.subr.mxu0 %v938_v0  ;;  %v255_v27 = vand.u32 4294901760, %v254_v52  ;;  %v295_v7 = vand.u32 4294901760, %v1165_v17  ;;  %vm786_vm4 = vcmp.lt.s32.totalorder %v982_v6, 2  ;;  %vm800_vm5 = vcmask 1024  }
  0x3e   :  { %236 = vmatprep.subr.mxu1 %v938_v0  ;;  %125 = vmatpush1.msra.mxu0 %v1076_v62  ;;  %v174_v52 = vsub.f32 %v1138_v61, %v173_v23  ;;  %v332_v63 = vand.u32 4294901760, %v1178_v41 }
  0x3f   :  { %242 = vmatpush1.msra.mxu1 %v241_v50  ;;  %126 = vmatprep.subr.mxu0 %v938_v0  ;;  %v275_v50 = vsub.f32 %v1116_v42, %v1393_v12  ;;  %v282_v12 = vsub.f32 %v1141_v2, %v1396_v37  ;;  %v181_v37 = vand.u32 4294901760, %v180_v57 }
  0x40   :  { %243 = vmatprep.subr.mxu1 %v938_v0  ;;  %128 = vmatpush1.msra.mxu0 %v1088_v5 }
  0x41   :  { %249 = vmatpush1.msra.mxu1 %v248_v3  ;;  %129 = vmatprep.subr.mxu0 %v938_v0  ;;  %v269_v3 = vand.u32 4294901760, %v268_v32  ;;  %v276_v54 = vand.u32 4294901760, %v275_v50  ;;  %v289_v32 = vsub.f32 %v1154_v8, %v288_v53  ;;  %v296_v50 = vsub.f32 %v1165_v17, %v295_v7 }
  0x42   :  { %250 = vmatprep.subr.mxu1 %v938_v0  ;;  %131 = vmatpush1.msra.mxu0 %v1108_v28 }
  0x43   :  { %256 = vmatpush1.msra.mxu1 %v255_v27  ;;  %132 = vmatprep.subr.mxu0 %v938_v0  ;;  %v175_v27 = vand.u32 4294901760, %v174_v52  ;;  %v290_v52 = vand.u32 4294901760, %v289_v32 }
  0x44   :  { %257 = vmatprep.subr.mxu1 %v938_v0  ;;  %134 = vmatpush1.msra.mxu0 %v1121_v46 }
  0x45   :  { %263 = vmatpush1.msra.mxu1 %v262_v18  ;;  %135 = vmatprep.subr.mxu0 %v938_v0  ;;  %v283_v18 = vand.u32 4294901760, %v282_v12  ;;  %v297_v12 = vand.u32 4294901760, %v296_v50 }
  0x46   :  { %264 = vmatprep.subr.mxu1 %v938_v0  ;;  %137 = vmatpush1.msra.mxu0 %v1135_v59 }
  0x47   :  { %270 = vmatpush1.msra.mxu1 %v269_v3  ;;  %168 = vmatprep.subr.mxu0 %v938_v0  ;;  %v333_v3 = vsub.f32 %v1178_v41, %v332_v63 }
  0x48   :  { %271 = vmatprep.subr.mxu1 %v938_v0  ;;  %170 = vmatpush2.msra.mxu0 %v1150_v13 }
  0x49   :  { %277 = vmatpush1.msra.mxu1 %v276_v54  ;;  %176 = vmatprep.mubr.f32.mxu0 %v175_v27  ;;  %v334_v57 = vand.u32 4294901760, %v333_v3 }
  0x4a   :  { %278 = vmatprep.subr.mxu1 %v938_v0  ;;  %344 = vmatprep.subr.mxu0 %v938_v0 }
  0x4b   :  { %182 = vmatmul.mubr.f32.vlgmr.msra.gmra.mxu0 %v181_v37  ;;  %284 = vmatpush1.msra.mxu1 %v283_v18 }
  0x4c   :  { %347 = vmatpush1.msra.mxu0 %v998_v21  ;;  %285 = vmatprep.subr.mxu1 %v938_v0  ;;  %v1402_v21 = vand.u32 4294901760, %v1116_v42 }
  0x4d   :  { %348 = vmatprep.subr.mxu0 %v938_v0  ;;  %291 = vmatpush1.msra.mxu1 %v290_v52 }
  0x4e   :  { %351 = vmatpush1.msra.mxu0 %v1007_v25  ;;  %292 = vmatprep.subr.mxu1 %v938_v0 }
  0x4f   :  { %352 = vmatprep.subr.mxu0 %v938_v0  ;;  %298 = vmatpush1.msra.mxu1 %v297_v12 }
  0x50   :  { %355 = vmatpush1.msra.mxu0 %v1010_v26  ;;  %329 = vmatprep.subr.mxu1 %v938_v0 }
  0x51   :  { %356 = vmatprep.subr.mxu0 %v938_v0  ;;  %335 = vmatpush2.msra.mxu1 %v334_v57 }
  0x52   :  { %337 = vmatprep.mubr.f32.mxu1 %v1123_v47  ;;  %359 = vmatpush1.msra.mxu0 %v1017_v31 }
  0x53   :  { %339 = vmatmul.mubr.f32.vlgmr.msra.gmra.mxu1 %v1094_v11  ;;  %360 = vmatprep.subr.mxu0 %v938_v0 }
  0x54   :  { %452 = vmatprep.subr.mxu1 %v938_v0  ;;  %363 = vmatpush1.msra.mxu0 %v1025_v36 }
  0x55   :  { %454 = vmatpush1.msra.mxu1 %v986_v10  ;;  %364 = vmatprep.subr.mxu0 %v938_v0 }
  0x56   :  { %455 = vmatprep.subr.mxu1 %v938_v0  ;;  %367 = vmatpush1.msra.mxu0 %v1035_v40 }
  0x57   :  { %457 = vmatpush1.msra.mxu1 %v988_v14  ;;  %368 = vmatprep.subr.mxu0 %v938_v0 }
  0x58   :  { %458 = vmatprep.subr.mxu1 %v938_v0  ;;  %371 = vmatpush1.msra.mxu0 %v1053_v49 }
  0x59   :  { %460 = vmatpush1.msra.mxu1 %v990_v15  ;;  %372 = vmatprep.subr.mxu0 %v938_v0 }
  0x5a   :  { %461 = vmatprep.subr.mxu1 %v938_v0  ;;  %375 = vmatpush1.msra.mxu0 %v1064_v56 }
  0x5b   :  { %463 = vmatpush1.msra.mxu1 %v992_v16  ;;  %376 = vmatprep.subr.mxu0 %v938_v0 }
  0x5c   :  { %464 = vmatprep.subr.mxu1 %v938_v0  ;;  %379 = vmatpush1.msra.mxu0 %v1073_v60 }
  0x5d   :  { %466 = vmatpush1.msra.mxu1 %v995_v20  ;;  %380 = vmatprep.subr.mxu0 %v938_v0 }
  0x5e   :  { %467 = vmatprep.subr.mxu1 %v938_v0  ;;  %383 = vmatpush1.msra.mxu0 %v1080_v1 }
  0x5f   :  { %469 = vmatpush1.msra.mxu1 %v1000_v22  ;;  %384 = vmatprep.subr.mxu0 %v938_v0 }
  0x60   :  { %470 = vmatprep.subr.mxu1 %v938_v0  ;;  %387 = vmatpush1.msra.mxu0 %v1092_v9 }
  0x61   :  { %472 = vmatpush1.msra.mxu1 %v1014_v30  ;;  %388 = vmatprep.subr.mxu0 %v938_v0 }
  0x62   :  { %473 = vmatprep.subr.mxu1 %v938_v0  ;;  %391 = vmatpush1.msra.mxu0 %v1104_v19 }
  0x63   :  { %475 = vmatpush1.msra.mxu1 %v1022_v35  ;;  %392 = vmatprep.subr.mxu0 %v938_v0 }
  0x64   :  { %476 = vmatprep.subr.mxu1 %v938_v0  ;;  %395 = vmatpush1.msra.mxu0 %v1116_v42 }
  0x65   :  { %478 = vmatpush1.msra.mxu1 %v1032_v39  ;;  %396 = vmatprep.subr.mxu0 %v938_v0 }
  0x66   :  { %479 = vmatprep.subr.mxu1 %v938_v0  ;;  %399 = vmatpush1.msra.mxu0 %v1141_v2 }
  0x67   :  { %481 = vmatpush1.msra.mxu1 %v1045_v45  ;;  %400 = vmatprep.subr.mxu0 %v938_v0 }
  0x68   :  { %482 = vmatprep.subr.mxu1 %v938_v0  ;;  %403 = vmatpush1.msra.mxu0 %v1154_v8 }
  0x69   :  { %484 = vmatpush1.msra.mxu1 %v1056_v51  ;;  %404 = vmatprep.subr.mxu0 %v938_v0 }
  0x6a   :  { %485 = vmatprep.subr.mxu1 %v938_v0  ;;  %407 = vmatpush1.msra.mxu0 %v1165_v17 }
  0x6b   :  { %487 = vmatpush1.msra.mxu1 %v1076_v62  ;;  %438 = vmatprep.subr.mxu0 %v938_v0 }
  0x6c   :  { %488 = vmatprep.subr.mxu1 %v938_v0  ;;  %441 = vmatpush2.msra.mxu0 %v1178_v41 }
  0x6d   :  { %444 = vmatprep.mubr.f32.mxu0 %v1138_v61  ;;  %490 = vmatpush1.msra.mxu1 %v1088_v5 }
  0x6e   :  { %447 = vmatmul.mubr.f32.vlgmr.msra.gmra.mxu0 %v1131_v58  ;;  %491 = vmatprep.subr.mxu1 %v938_v0 }
  0x6f   :  { %545 = vmatprep.subr.mxu0 %v938_v0  ;;  %493 = vmatpush1.msra.mxu1 %v1108_v28 }
  0x70   :  { %549 = vmatpush1.msra.mxu0 %v190_v29  ;;  %494 = vmatprep.subr.mxu1 %v938_v0 }
  0x71   :  { %550 = vmatprep.subr.mxu0 %v938_v0  ;;  %496 = vmatpush1.msra.mxu1 %v1121_v46 }
  0x72   :  { %554 = vmatpush1.msra.mxu0 %v197_v33  ;;  %497 = vmatprep.subr.mxu1 %v938_v0 }
  0x73   :  { %555 = vmatprep.subr.mxu0 %v938_v0  ;;  %499 = vmatpush1.msra.mxu1 %v1135_v59 }
  0x74   :  { %559 = vmatpush1.msra.mxu0 %v204_v34  ;;  %530 = vmatprep.subr.mxu1 %v938_v0 }
  0x75   :  { %560 = vmatprep.subr.mxu0 %v938_v0  ;;  %532 = vmatpush2.msra.mxu1 %v1150_v13 }
  0x76   :  { %536 = vmatprep.mubr.f32.mxu1 %v173_v23  ;;  %564 = vmatpush1.msra.mxu0 %v211_v38 }
  0x77   :  { %540 = vmatmul.mubr.f32.vlgmr.msra.gmra.mxu1 %v179_v43  ;;  %565 = vmatprep.subr.mxu0 %v938_v0 }
  0x78   :  { %668 = vmatprep.subr.mxu1 %v938_v0  ;;  %569 = vmatpush1.msra.mxu0 %v218_v44 }
  0x79   :  { %670 = vmatpush1.msra.mxu1 %v986_v10  ;;  %570 = vmatprep.subr.mxu0 %v938_v0  ;;  %v1397_v10 = vand.u32 4294901760, %v1064_v56 }
  0x7a   :  { %671 = vmatprep.subr.mxu1 %v938_v0  ;;  %574 = vmatpush1.msra.mxu0 %v225_v48 }
  0x7b   :  { %673 = vmatpush1.msra.mxu1 %v988_v14  ;;  %575 = vmatprep.subr.mxu0 %v938_v0  ;;  %v1398_v14 = vand.u32 4294901760, %v1073_v60 }
  0x7c   :  { %674 = vmatprep.subr.mxu1 %v938_v0  ;;  %579 = vmatpush1.msra.mxu0 %v232_v55 }
  0x7d   :  { %676 = vmatpush1.msra.mxu1 %v990_v15  ;;  %580 = vmatprep.subr.mxu0 %v938_v0  ;;  %v1399_v15 = vand.u32 4294901760, %v1080_v1 }
  0x7e   :  { %677 = vmatprep.subr.mxu1 %v938_v0  ;;  %584 = vmatpush1.msra.mxu0 %v1397_v10 }
  0x7f   :  { %679 = vmatpush1.msra.mxu1 %v992_v16  ;;  %585 = vmatprep.subr.mxu0 %v938_v0  ;;  %v1400_v16 = vand.u32 4294901760, %v1092_v9 }
  0x80   :  { %680 = vmatprep.subr.mxu1 %v938_v0  ;;  %589 = vmatpush1.msra.mxu0 %v1398_v14 }
  0x81   :  { %682 = vmatpush1.msra.mxu1 %v995_v20  ;;  %590 = vmatprep.subr.mxu0 %v938_v0  ;;  %v1401_v20 = vand.u32 4294901760, %v1104_v19 }
  0x82   :  { %683 = vmatprep.subr.mxu1 %v938_v0  ;;  %594 = vmatpush1.msra.mxu0 %v1399_v15 }
  0x83   :  { %685 = vmatpush1.msra.mxu1 %v1000_v22  ;;  %595 = vmatprep.subr.mxu0 %v938_v0  ;;  %v1403_v22 = vand.u32 4294901760, %v1141_v2 }
  0x84   :  { %686 = vmatprep.subr.mxu1 %v938_v0  ;;  %599 = vmatpush1.msra.mxu0 %v1400_v16 }
  0x85   :  { %688 = vmatpush1.msra.mxu1 %v1014_v30  ;;  %600 = vmatprep.subr.mxu0 %v938_v0 }
  0x86   :  { %689 = vmatprep.subr.mxu1 %v938_v0  ;;  %604 = vmatpush1.msra.mxu0 %v1401_v20 }
  0x87   :  { %691 = vmatpush1.msra.mxu1 %v1022_v35  ;;  %605 = vmatprep.subr.mxu0 %v938_v0 }
  0x88   :  { %692 = vmatprep.subr.mxu1 %v938_v0  ;;  %609 = vmatpush1.msra.mxu0 %v1402_v21 }
  0x89   :  { %694 = vmatpush1.msra.mxu1 %v1032_v39  ;;  %610 = vmatprep.subr.mxu0 %v938_v0 }
  0x8a   :  { %695 = vmatprep.subr.mxu1 %v938_v0  ;;  %614 = vmatpush1.msra.mxu0 %v1403_v22 }
  0x8b   :  { %697 = vmatpush1.msra.mxu1 %v1045_v45  ;;  %615 = vmatprep.subr.mxu0 %v938_v0 }
  0x8c   :  { %698 = vmatprep.subr.mxu1 %v938_v0  ;;  %619 = vmatpush1.msra.mxu0 %v288_v53 }
  0x8d   :  { %700 = vmatpush1.msra.mxu1 %v1056_v51  ;;  %620 = vmatprep.subr.mxu0 %v938_v0 }
  0x8e   :  { %701 = vmatprep.subr.mxu1 %v938_v0  ;;  %624 = vmatpush1.msra.mxu0 %v295_v7 }
  0x8f   :  { %703 = vmatpush1.msra.mxu1 %v1076_v62  ;;  %655 = vmatprep.subr.mxu0 %v938_v0 }
  0x90   :  { %704 = vmatprep.subr.mxu1 %v938_v0  ;;  %659 = vmatpush2.msra.mxu0 %v332_v63  ;;  %v57_v63 = vld [vmem:[%s1387_s2] sm:$0x3]  ;;  %s943_s2 = smov [#allocation8]  }
  0x91   :  { %661 = vmatprep.mubr.f32.mxu0 %v1123_v47  ;;  %706 = vmatpush1.msra.mxu1 %v1088_v5  ;;  %s820_s8 = sshll.u32 %s943_s2, 4  ;;  %s821_s8 = int_to_ptr.vmem [resolvable:$true] %s820_s8 }
  0x92   :  { %663 = vmatmul.mubr.f32.vlgmr.msra.gmra.mxu0 %v1094_v11  ;;  %707 = vmatprep.subr.mxu1 %v938_v0  ;;  %s907_s11 = scalar_lea.vmem %s821_s8, 128  ;;  %p912_p2 = scmp.lt.s32.totalorder %s821_s8, %s821_s8 }
  0x93   :  { %750 = vmatprep.mubr.f32.mxu1 %v1123_v47  ;;  %709 = vmatpush1.msra.mxu1 %v1108_v28  ;;  %p908_p1 = scmp.ne.s32.totalorder %s821_s8, %s907_s11  ;;  %p913_p3 = scmp.lt.s32.totalorder %s907_s11, %s907_s11 }
  0x94   :  { %710 = vmatprep.subr.mxu1 %v938_v0 }
  0x95   :  { %712 = vmatpush1.msra.mxu1 %v1121_v46  ;;  %p914_p4 = por %p913_p3, %p912_p2 }
  0x96   :  { %713 = vmatprep.subr.mxu1 %v938_v0 }
  0x97   :  { %715 = vmatpush1.msra.mxu1 %v1135_v59  ;;  %p915_p5 = pnand %p914_p4, %p908_p1 }
  0x98   :  { %746 = vmatprep.subr.mxu1 %v938_v0 }
  0x99   :  { %v771_v25 = vpop.permute.xlu0 %770  ;;  %748 = vmatpush2.msra.mxu1 %v1150_v13 }
  0x9a   :  { %v773_v26 = vsub.f32 %v980_v4, %v771_v25  ;;  %752 = vmatmul.mubr.f32.vlgmr.msra.gmra.mxu1 %v1094_v11 }
  0x9c   :  { %v774_v29 = vmul.f32 %v773_v26, %v773_v26 }
  0x9e   :  { %776 = vrot.lane.b32.xlu0 %v774_v29, %s941_s3 }
 0x10b   :  { %v183_v30 = vpop.f32.mrf.mxu0 }
 0x10d   :  { %v185_v31 = vpop.f32.mrf.mxu0 }
 0x110   :  { %v777_v60 = vpop.permute.xlu0 %776 }
 0x111   :  { %v779_v5 = vadd.f32 %v777_v60, %v774_v29 }
 0x113   :  { %v340_v33 = vpop.f32.mrf.mxu1 }
 0x114   :  { %v341_v34 = vadd.f32 %v340_v33, %v183_v30 }
 0x115   :  { %v342_v35 = vpop.f32.mrf.mxu1 }
 0x12e   :  { %v448_v36 = vpop.f32.mrf.mxu0 }
 0x12f   :  { %v449_v45 = vadd.f32 %v448_v36, %v341_v34 }
 0x130   :  { %v450_v38 = vpop.f32.mrf.mxu0 }
 0x137   :  { %v541_v39 = vpop.f32.mrf.mxu1 }
 0x138   :  { %v542_v48 = vadd.f32 %v541_v39, %v449_v45 }
 0x139   :  { %v543_v40 = vpop.f32.mrf.mxu1 }
 0x152   :  { %v664_v0 = vpop.f32.mrf.mxu0 }
 0x153   :  { %v665_v49 = vadd.f32 %v664_v0, %v542_v48 }
 0x154   :  { %v666_v44 = vpop.f32.mrf.mxu0 }
 0x15a   :  { %v753_v4 = vpop.f32.mrf.mxu1 }
 0x15b   :  { %v754_v51 = vadd.f32 %v753_v4, %v665_v49 }
 0x15c   :  { %v755_v55 = vpop.f32.mrf.mxu1 }
 0x15d   :  { %843 = vrsqrt.f32 %v754_v51  ;;  %vm759_vm1 = vcmp.eq.f32.partialorder %v754_v51, inf  ;;  %v762_v1 = vand.u32 2147483648, %v754_v51  ;;  %vm761_vm2 = vcmp.eq.f32.partialorder %v754_v51, 0.0 }
 0x15e   :  { %845 = vrsqrt.f32 %v779_v5 }
 0x16a   :  { %v844_v56 = vpop.eup %843 }
 0x16b   :  { %v758_v62 = vmul.f32 %v844_v56, %v754_v51  ;;  %v846_v19 = vpop.eup %845 }
 0x16c   :  { %v794_v28 = vrot.slane %v846_v19, %v1003_v24 }
 0x16d   :  { %v760_v7 = vsel %vm759_vm1, %v754_v51, %v758_v62 }
 0x16e   :  { %v763_v9 = vsel %vm761_vm2, %v762_v1, %v760_v7 }
 0x16f   :  { %v764_v11 = vmul.f32 %v763_v9, %v57_v63 }
 0x171   :  { %v766_v17 = vsel %vm765_vm3, %v764_v11, 0.0 }
 0x172   :  { %767 = vadd.xlane.f32.xlu1 %v766_v17 }
 0x183   :  { %795 = vrot.lane.b32.xlu1 %v794_v28, %s942_s7 }
 0x1fb   :  { %v768_v37 = vpop.xlane.xlu1 %767 }
 0x1ff   :  { %v796_v42 = vpop.permute.xlu1 %795 }
 0x200   :  { %v798_v46 = vmul.f32 %v796_v42, %v768_v37 }
 0x202   :  { %v799_v47 = vsel %vm786_vm4, %v798_v46, 0.0 }
 0x203   :  { %v801_v53 = vsel %vm800_vm5, %v799_v47, 0.0 }
 0x204   :  { %802 = vadd.xlane.f32.xlu0 %v801_v53 }
 0x28d   :  { %v803_v58 = vpop.xlane.xlu0 %802 }
 0x28e   :  { %v804_v59 = vrot.slane %v803_v58, 4 }
 0x290   :  { %v805_v61 = vadd.f32 %v804_v59, %v803_v58 }
 0x292   :  { %v806_v2 = vrot.slane %v805_v61, 2 }
 0x294   :  { %v807_v13 = vadd.f32 %v806_v2, %v805_v61 }
 0x296   :  { %v808_v23 = vrot.slane %v807_v13, 1 }
 0x298   :  { %v809_v8 = vadd.f32 %v808_v23, %v807_v13 }
 0x29a   :  { %830 = vpush %v809_v8 }
 0x2cb   :  { %s831_s9 = spop %830 }
 0x2cc   :  { %s811_s10 = smul.f32 0.007352941, %s831_s9 }
 0x2ce   :  { %v812_v24 = vstv %s811_s10 }
 0x2cf   :  { %813 = vst [vmem:[#allocation8] sm:$0xff] %v812_v24 }
 0x2d0   :  { %918 = shalt.err (!%p915_p5)
}
 0x2d1   :  { %823 = dma.vmem_to_hbm [thread:$0]  %s821_s8, 128, %s1389_s4, [#allocation4]  }
 0x2d2   :  { %931 = dma.done.wait [#allocation4], 128  }
 0x2d3   :  { %932 = vsyncadd [#allocation4], 4294967168 }
 0x2d4   :  { %827 = vsyncpa [#allocation3], 1 }
 0x2d5   :  { %828 = vsyncpa [#allocation6], 1 }
 0x2d6   :  { %829 = vsyncpa [#allocation4], 1 }

</bundles_post_ra>
